<compile_context>
chip_gen: v7x
topology: tpu7x:2x2x1
jax: 0.10.0
libtpu: 0.0.40
codegen_flags: <defaults>
</compile_context>

<pallas_src>
import functools

import jax
import jax.numpy as jnp
from jax import lax
from jax.experimental import pallas as pl
from jax.experimental.pallas import tpu as pltpu

_LANE = 128
_SUBLANE = 8


def _round_up(x, m):
    return (x + m - 1) // m * m


# ----------------------------------------------------------------------------- kernel


def _fused_mlp_kernel(x_ref, w1_ref, w2_ref, o_ref, act_ref, *, n_layer):
    # x_ref  : (tm, n_in_p)                bf16 input row-tile
    # w1_ref : (n_layer, n_in_p, n_out_p)  bf16, pre-transposed to (in, out), resident
    # w2_ref : (n_layer, n_out_p, n_in_p)  bf16, pre-transposed to (out, in->n_in), resident
    # o_ref  : (tm, n_in_p)                f32 output row-tile
    # act_ref: (tm, n_in_p)                bf16 VMEM scratch, activation carried across layers
    act_ref[...] = x_ref[...]

    def layer(l, carry):
        a = act_ref[...]                                            # (tm, n_in_p) bf16
        h = jnp.dot(a, w1_ref[l], preferred_element_type=jnp.float32)   # (tm, n_out_p) f32
        y = jnp.dot(h.astype(w2_ref.dtype), w2_ref[l],
                    preferred_element_type=jnp.float32)                 # (tm, n_in_p) f32
        act_ref[...] = y.astype(act_ref.dtype)
        return carry

    lax.fori_loop(0, n_layer, layer, 0, unroll=(n_layer <= 4))
    o_ref[...] = act_ref[...].astype(o_ref.dtype)


# ----------------------------------------------------------------------------- glue


def prepare_params(w1_list, w2_list, compute_dtype=jnp.bfloat16):
    """One-time weight prep: pad feature dims to the lane width (128), transpose the
    PyTorch (out, in) layout to (in, out) for plain x @ W matmuls, stack over layers,
    and cast to the compute dtype. Done once, never per forward call."""
    n_layer = len(w1_list)
    n_out, n_in = w1_list[0].shape
    n_in_p = _round_up(n_in, _LANE)
    n_out_p = _round_up(n_out, _LANE)

    w1s = jnp.zeros((n_layer, n_in_p, n_out_p), compute_dtype)
    w2s = jnp.zeros((n_layer, n_out_p, n_in_p), compute_dtype)
    for l, (w1, w2) in enumerate(zip(w1_list, w2_list)):
        w1s = w1s.at[l, :n_in, :n_out].set(jnp.asarray(w1).T.astype(compute_dtype))
        w2s = w2s.at[l, :n_out, :n_in].set(jnp.asarray(w2).T.astype(compute_dtype))
    return w1s, w2s


def _choose_tm(M, n_in_p, n_out_p, n_layer, vmem_budget_bytes=40 << 20):
    """Largest row tile that fits a conservative VMEM model (safe on v7x's 64 MiB too)."""
    cb = 2  # bf16 bytes
    w_vmem = 2 * 2 * n_layer * n_in_p * n_out_p * cb   # both weight stacks, 2 bufs each

    def fits(tm):
        io = 2 * tm * n_in_p * cb + 2 * tm * n_in_p * 4     # x (bf16) + out (f32), 2 bufs
        scratch = tm * n_in_p * cb                          # activation scratch
        interm = tm * (n_in_p + n_out_p) * 4                # f32 h / y vreg-spill headroom
        return w_vmem + io + scratch + interm <= vmem_budget_bytes

    m_aligned = _round_up(M, _SUBLANE)
    for cand in (1024, 768, 512, 384, 256, 128, 64, 32, 16, 8):
        tm = min(cand, m_aligned)
        if fits(tm):
            return tm
    raise NotImplementedError(
        "Stacked weights exceed the VMEM budget; needs a contraction-tiling grid axis "
        "(see TODO(synk) above)."
    )


@functools.partial(jax.jit, static_argnames=("tm",))
def _forward_jit(x, w1s, w2s, *, tm):
    n_batch, n_seq, n_in = x.shape
    n_layer, n_in_p, n_out_p = w1s.shape
    M = n_batch * n_seq
    compute_dtype = w1s.dtype
    cb = jnp.dtype(compute_dtype).itemsize

    # Flatten, cast to compute dtype, zero-pad feature dim to lane width (semantics
    # preserved: padded weight rows/cols are zero, so padding columns stay zero).
    x2d = x.reshape(M, n_in).astype(compute_dtype)
    if n_in_p != n_in:
        x2d = jnp.pad(x2d, ((0, 0), (0, n_in_p - n_in)))

    # Explicit VMEM limit derived from the same model as _choose_tm (with headroom).
    w_vmem = 2 * (w1s.size + w2s.size) * cb
    io_vmem = 2 * tm * n_in_p * cb + 2 * tm * n_in_p * 4
    scratch_vmem = tm * n_in_p * cb
    interm_vmem = tm * (n_in_p + n_out_p) * 4
    vmem_limit = int(1.25 * (w_vmem + io_vmem + scratch_vmem + interm_vmem)) + (4 << 20)
    vmem_limit = min(max(vmem_limit, 32 << 20), 96 << 20)

    kernel = functools.partial(_fused_mlp_kernel, n_layer=n_layer)

    y2d = pl.pallas_call(
        kernel,
        out_shape=jax.ShapeDtypeStruct((M, n_in_p), jnp.float32),
        grid_spec=pltpu.PrefetchScalarGridSpec(
            num_scalar_prefetch=0,
            grid=(pl.cdiv(M, tm),),
            in_specs=[
                pl.BlockSpec((tm, n_in_p), lambda i: (i, 0)),            # x row tile
                pl.BlockSpec(w1s.shape, lambda i: (0, 0, 0)),            # W1 stack (resident)
                pl.BlockSpec(w2s.shape, lambda i: (0, 0, 0)),            # W2 stack (resident)
            ],
            out_specs=pl.BlockSpec((tm, n_in_p), lambda i: (i, 0)),
            scratch_shapes=[pltpu.VMEM((tm, n_in_p), compute_dtype)],    # activation carry
        ),
        compiler_params=pltpu.CompilerParams(
            dimension_semantics=("parallel",),     # row tiles split across TCs on v7x
            vmem_limit_bytes=vmem_limit,
        ),
    )(x2d, w1s, w2s)

    if n_in_p != n_in:
        y2d = y2d[:, :n_in]
    return y2d.reshape(n_batch, n_seq, n_in).astype(x.dtype)


def mlp_linear_forward(x, w1s, w2s, *, tm=None):
    """Forward pass of MLPLinear (all layers fused into one kernel).

    x   : (n_batch, n_seq, n_in) f32
    w1s : (n_layer, n_in_p, n_out_p) from prepare_params()
    w2s : (n_layer, n_out_p, n_in_p) from prepare_params()
    """
    n_batch, n_seq, _ = x.shape
    n_layer, n_in_p, n_out_p = w1s.shape
    if tm is None:
        tm = _choose_tm(n_batch * n_seq, n_in_p, n_out_p, n_layer)
    return _forward_jit(x, w1s, w2s, tm=tm)


# ----------------------------------------------------------------------------- references


def mlp_linear_reference(x, w1_list, w2_list):
    """Pure-JAX f32 reference matching the PyTorch module semantics exactly."""
    y = x
    for w1, w2 in zip(w1_list, w2_list):
        y = jnp.einsum("bsi,oi->bso", y, w1)   # Linear(n_in -> n_out), no bias
        y = jnp.einsum("bso,io->bsi", y, w2)   # Linear(n_out -> n_in), no bias
    return y


def mlp_linear_reference_matched(x, w1_list, w2_list):
    """Cast-matched reference: bf16 operands, f32 accumulation (same pattern as kernel)."""
    y = x.astype(jnp.bfloat16)
    for w1, w2 in zip(w1_list, w2_list):
        h = jnp.einsum("bsi,oi->bso", y, w1.astype(jnp.bfloat16),
                       preferred_element_type=jnp.float32)
        y = jnp.einsum("bso,io->bsi", h.astype(jnp.bfloat16), w2.astype(jnp.bfloat16),
                       preferred_element_type=jnp.float32)
        y = y.astype(jnp.bfloat16)
    return y.astype(jnp.float32)


# ----------------------------------------------------------------------------- main


if __name__ == "__main__":
    # Small, forward-consistent shapes.
    n_layer = 2
    n_batch, n_seq, n_in, n_out = 2, 8, 32, 64

    key = jax.random.PRNGKey(0)
    kx, *wkeys = jax.random.split(key, 1 + 2 * n_layer)

    x = jax.random.normal(kx, (n_batch, n_seq, n_in), dtype=jnp.float32)

    # Deterministic weight init, PyTorch nn.Linear shape convention (out, in).
    w1_list, w2_list = [], []
    for i in range(n_layer):
        k1, k2 = wkeys[2 * i], wkeys[2 * i + 1]
        w1_list.append(
            jax.random.normal(k1, (n_out, n_in), dtype=jnp.float32) * (1.0 / n_in) ** 0.5
        )
        w2_list.append(
            jax.random.normal(k2, (n_in, n_out), dtype=jnp.float32) * (1.0 / n_out) ** 0.5
        )

    # One-time parameter prep (pad + transpose + stack + bf16 cast).
    w1s, w2s = prepare_params(w1_list, w2_list)

    out = mlp_linear_forward(x, w1s, w2s)
    out = jax.block_until_ready(out)
    assert out.shape == (n_batch, n_seq, n_in), out.shape

    ref_matched = mlp_linear_reference_matched(x, w1_list, w2_list)
    ref_f32 = mlp_linear_reference(x, w1_list, w2_list)
    assert jnp.allclose(out, ref_matched, atol=2e-2, rtol=2e-2), \
        "mismatch vs cast-matched (bf16) reference"
    assert jnp.allclose(out, ref_f32, atol=1.5e-1, rtol=1.5e-1), \
        "mismatch vs f32 module reference"

    print("KERNEL_OK")
</pallas_src>

<mosaic_0001>
module attributes {stable_mosaic.version = 11 : i64} {
  func.func @_fused_mlp_kernel(%arg0: i32, %arg1: memref<16x128xbf16, #tpu.memory_space<vmem>>, %arg2: memref<2x128x128xbf16, #tpu.memory_space<vmem>>, %arg3: memref<2x128x128xbf16, #tpu.memory_space<vmem>>, %arg4: memref<16x128xf32, #tpu.memory_space<vmem>>, %arg5: memref<16x128xbf16, #tpu.memory_space<vmem>>) attributes {dimension_semantics = [#tpu.dimension_semantics<parallel>], iteration_bounds = array<i64: 1>, scalar_prefetch = 0 : i64, scratch_operands = 1 : i64, tpu.core_type = #tpu.core_type<tc>, window_params = [{transform_indices = @transform_0, window_bounds = array<i64: 16, 128>}, {pipeline_mode = #tpu.pipeline_mode<synchronous>, transform_indices = @transform_1, window_bounds = array<i64: 2, 128, 128>}, {pipeline_mode = #tpu.pipeline_mode<synchronous>, transform_indices = @transform_2, window_bounds = array<i64: 2, 128, 128>}, {transform_indices = @transform_3, window_bounds = array<i64: 16, 128>}]} {
    %c0 = arith.constant 0 : index
    %c0_0 = arith.constant 0 : index
    %0 = vector.load %arg1[%c0, %c0_0] : memref<16x128xbf16, #tpu.memory_space<vmem>>, vector<16x128xbf16>
    %c0_1 = arith.constant 0 : index
    %c0_2 = arith.constant 0 : index
    %1 = vector.load %arg5[%c0_1, %c0_2] : memref<16x128xbf16, #tpu.memory_space<vmem>>, vector<16x128xbf16>
    tpu.vector_store %arg5[%c0_1, %c0_2], %0 {strides = array<i32>} : memref<16x128xbf16, #tpu.memory_space<vmem>>, vector<16x128xbf16>,
    %c0_i32 = arith.constant 0 : i32
    %c0_3 = arith.constant 0 : index
    %c0_4 = arith.constant 0 : index
    %2 = vector.load %arg5[%c0_3, %c0_4] : memref<16x128xbf16, #tpu.memory_space<vmem>>, vector<16x128xbf16>
    %3 = arith.index_cast %c0_i32 : i32 to index
    %c0_5 = arith.constant 0 : index
    %c0_6 = arith.constant 0 : index
    %4 = vector.load %arg2[%3, %c0_5, %c0_6] : memref<2x128x128xbf16, #tpu.memory_space<vmem>>, vector<1x128x128xbf16>
    %5 = vector.shape_cast %4 : vector<1x128x128xbf16> to vector<128x128xbf16>
    %cst = arith.constant dense<0.000000e+00> : vector<16x128xf32>
    %6 = tpu.matmul %2, %5, %cst {dimension_numbers = #tpu.dot_dimension_numbers<[1], [0], [0], [1], [0, 0, 1, 1], [], []>} : vector<16x128xbf16>, vector<128x128xbf16>, vector<16x128xf32> -> vector<16x128xf32>
    %7 = arith.truncf %6 : vector<16x128xf32> to vector<16x128xbf16>
    %8 = arith.index_cast %c0_i32 : i32 to index
    %c0_7 = arith.constant 0 : index
    %c0_8 = arith.constant 0 : index
    %9 = vector.load %arg3[%8, %c0_7, %c0_8] : memref<2x128x128xbf16, #tpu.memory_space<vmem>>, vector<1x128x128xbf16>
    %10 = vector.shape_cast %9 : vector<1x128x128xbf16> to vector<128x128xbf16>
    %cst_9 = arith.constant dense<0.000000e+00> : vector<16x128xf32>
    %11 = tpu.matmul %7, %10, %cst_9 {dimension_numbers = #tpu.dot_dimension_numbers<[1], [0], [0], [1], [0, 0, 1, 1], [], []>} : vector<16x128xbf16>, vector<128x128xbf16>, vector<16x128xf32> -> vector<16x128xf32>
    %12 = arith.truncf %11 : vector<16x128xf32> to vector<16x128xbf16>
    %c0_10 = arith.constant 0 : index
    %c0_11 = arith.constant 0 : index
    %13 = vector.load %arg5[%c0_10, %c0_11] : memref<16x128xbf16, #tpu.memory_space<vmem>>, vector<16x128xbf16>
    tpu.vector_store %arg5[%c0_10, %c0_11], %12 {strides = array<i32>} : memref<16x128xbf16, #tpu.memory_space<vmem>>, vector<16x128xbf16>,
    %c1_i32 = arith.constant 1 : i32
    %c0_12 = arith.constant 0 : index
    %c0_13 = arith.constant 0 : index
    %14 = vector.load %arg5[%c0_12, %c0_13] : memref<16x128xbf16, #tpu.memory_space<vmem>>, vector<16x128xbf16>
    %15 = arith.index_cast %c1_i32 : i32 to index
    %c0_14 = arith.constant 0 : index
    %c0_15 = arith.constant 0 : index
    %16 = vector.load %arg2[%15, %c0_14, %c0_15] : memref<2x128x128xbf16, #tpu.memory_space<vmem>>, vector<1x128x128xbf16>
    %17 = vector.shape_cast %16 : vector<1x128x128xbf16> to vector<128x128xbf16>
    %cst_16 = arith.constant dense<0.000000e+00> : vector<16x128xf32>
    %18 = tpu.matmul %14, %17, %cst_16 {dimension_numbers = #tpu.dot_dimension_numbers<[1], [0], [0], [1], [0, 0, 1, 1], [], []>} : vector<16x128xbf16>, vector<128x128xbf16>, vector<16x128xf32> -> vector<16x128xf32>
    %19 = arith.truncf %18 : vector<16x128xf32> to vector<16x128xbf16>
    %20 = arith.index_cast %c1_i32 : i32 to index
    %c0_17 = arith.constant 0 : index
    %c0_18 = arith.constant 0 : index
    %21 = vector.load %arg3[%20, %c0_17, %c0_18] : memref<2x128x128xbf16, #tpu.memory_space<vmem>>, vector<1x128x128xbf16>
    %22 = vector.shape_cast %21 : vector<1x128x128xbf16> to vector<128x128xbf16>
    %cst_19 = arith.constant dense<0.000000e+00> : vector<16x128xf32>
    %23 = tpu.matmul %19, %22, %cst_19 {dimension_numbers = #tpu.dot_dimension_numbers<[1], [0], [0], [1], [0, 0, 1, 1], [], []>} : vector<16x128xbf16>, vector<128x128xbf16>, vector<16x128xf32> -> vector<16x128xf32>
    %24 = arith.truncf %23 : vector<16x128xf32> to vector<16x128xbf16>
    %c0_20 = arith.constant 0 : index
    %c0_21 = arith.constant 0 : index
    %25 = vector.load %arg5[%c0_20, %c0_21] : memref<16x128xbf16, #tpu.memory_space<vmem>>, vector<16x128xbf16>
    tpu.vector_store %arg5[%c0_20, %c0_21], %24 {strides = array<i32>} : memref<16x128xbf16, #tpu.memory_space<vmem>>, vector<16x128xbf16>,
    %c2_i32 = arith.constant 2 : i32
    %c0_22 = arith.constant 0 : index
    %c0_23 = arith.constant 0 : index
    %26 = vector.load %arg5[%c0_22, %c0_23] : memref<16x128xbf16, #tpu.memory_space<vmem>>, vector<16x128xbf16>
    %27 = arith.extf %26 : vector<16x128xbf16> to vector<16x128xf32>
    %c0_24 = arith.constant 0 : index
    %c0_25 = arith.constant 0 : index
    %28 = vector.load %arg4[%c0_24, %c0_25] : memref<16x128xf32, #tpu.memory_space<vmem>>, vector<16x128xf32>
    tpu.vector_store %arg4[%c0_24, %c0_25], %27 {strides = array<i32>} : memref<16x128xf32, #tpu.memory_space<vmem>>, vector<16x128xf32>,
    return
  }
  func.func @transform_0(%arg0: i32) -> (i32, i32) {
    %c0_i32 = arith.constant 0 : i32
    %c0_i32_0 = arith.constant 0 : i32
    return %arg0, %c0_i32 : i32, i32
  }
  func.func @transform_1(%arg0: i32) -> (i32, i32, i32) {
    %c0_i32 = arith.constant 0 : i32
    %c0_i32_0 = arith.constant 0 : i32
    %c0_i32_1 = arith.constant 0 : i32
    %c0_i32_2 = arith.constant 0 : i32
    return %c0_i32, %c0_i32_0, %c0_i32_1 : i32, i32, i32
  }
  func.func @transform_2(%arg0: i32) -> (i32, i32, i32) {
    %c0_i32 = arith.constant 0 : i32
    %c0_i32_0 = arith.constant 0 : i32
    %c0_i32_1 = arith.constant 0 : i32
    %c0_i32_2 = arith.constant 0 : i32
    return %c0_i32, %c0_i32_0, %c0_i32_1 : i32, i32, i32
  }
  func.func @transform_3(%arg0: i32) -> (i32, i32) {
    %c0_i32 = arith.constant 0 : i32
    %c0_i32_0 = arith.constant 0 : i32
    return %arg0, %c0_i32 : i32, i32
  }
}

</mosaic_0001>

<bundles_post_ra>
// kernel: _forward_jit.1
= control target key start
LH: loop header
LB: loop body
LE: loop exit
PB: predicated region body
PF: predicated region fallthrough
CT: control target
= control target key end

     0   :  { %8 = vsyncpa [#allocation4], 0  ;;  %s828_s0 = inlined_call_operand.vmem [shape: bf16[16,128], index: 0, kind: input, shape index: {}]   ;;  %s829_s1 = inlined_call_operand.hbm [shape: bf16[2,128,128], index: 1, kind: input, shape index: {}]   ;;  %s830_s2 = inlined_call_operand.hbm [shape: bf16[2,128,128], index: 2, kind: input, shape index: {}]   ;;  %s831_s3 = inlined_call_operand.vmem [shape: f32[16,128], index: 3, kind: output, shape index: {}]  }
   0x1   :  { %9 = vsyncpa [#allocation6], 0  ;;  %s729_s12 = smov [#allocation3]   ;;  %s681_s16 = scalar_lea.hbm %s829_s1, 2048 }
   0x2   :  { %s17_s13 = sshll.u32 %s729_s12, 4  ;;  %p682_p0 = scmp.ne.s32.totalorder %s829_s1, %s681_s16  ;;  %s18_s13 = int_to_ptr.vmem [resolvable:$true] %s17_s13 }
   0x3   :  { %p685_p1 = scmp.lt.u32.totalorder %s681_s16, %s829_s1 }
   0x5   :  { %p687_p2 = pnand %p685_p1, %p682_p0 }
   0x7   :  { %690 = shalt.err (!%p687_p2)
}
   0x8   :  { %s691_s21 = scalar_lea.vmem %s18_s13, 2048  ;;  %p696_p4 = scmp.lt.s32.totalorder %s18_s13, %s18_s13 }
   0x9   :  { %p692_p3 = scmp.ne.s32.totalorder %s18_s13, %s691_s21  ;;  %p697_p5 = scmp.lt.s32.totalorder %s691_s21, %s691_s21 }
   0xb   :  { %p698_p6 = por %p697_p5, %p696_p4 }
   0xd   :  { %p699_p7 = pnand %p698_p6, %p692_p3 }
   0xf   :  { %702 = shalt.err (!%p699_p7)
}
  0x10   :  { %s730_s22 = smov 64   ;;  %s731_s23 = smov 4  }
  0x11   :  { %23 = dma.hbm_to_vmem [thread:$0]  %s829_s1, 2048, %s18_s13, [#allocation4], %s730_s22, %s730_s22, %s731_s23  }
  0x12   :  { %s732_s26 = smov [#allocation5]   ;;  %s703_s30 = scalar_lea.hbm %s830_s2, 2048 }
  0x13   :  { %s29_s27 = sshll.u32 %s732_s26, 4  ;;  %p704_p8 = scmp.ne.s32.totalorder %s830_s2, %s703_s30  ;;  %s30_s27 = int_to_ptr.vmem [resolvable:$true] %s29_s27 }
  0x14   :  { %p707_p9 = scmp.lt.u32.totalorder %s703_s30, %s830_s2 }
  0x16   :  { %p709_p10 = pnand %p707_p9, %p704_p8 }
  0x18   :  { %712 = shalt.err (!%p709_p10)
}
  0x19   :  { %s713_s8 = scalar_lea.vmem %s30_s27, 2048  ;;  %p718_p12 = scmp.lt.s32.totalorder %s30_s27, %s30_s27 }
  0x1a   :  { %p714_p11 = scmp.ne.s32.totalorder %s30_s27, %s713_s8  ;;  %p719_p13 = scmp.lt.s32.totalorder %s713_s8, %s713_s8 }
  0x1c   :  { %p720_p0 = por %p719_p13, %p718_p12 }
  0x1e   :  { %p721_p1 = pnand %p720_p0, %p714_p11 }
  0x20   :  { %724 = shalt.err (!%p721_p1)
}
  0x21   :  { %35 = dma.hbm_to_vmem [thread:$0]  %s830_s2, 2048, %s30_s27, [#allocation6], %s730_s22, %s730_s22, %s731_s23  }
  0x22   :  { %725 = dma.done.wait [#allocation4], 2048  }
  0x23   :  { %726 = vsyncadd [#allocation4], 4294965248 }
  0x24   :  { %727 = dma.done.wait [#allocation6], 2048  }
  0x25   :  { %728 = vsyncadd [#allocation6], 4294965248  ;;  %v733_v0 = vmov 0.0   ;;  %vm734_vm0 = vmmov 0   ;;  %v648_v1 = vld [vmem:[#allocation3] sm:$0xff]   ;;  %v649_v2 = vld [vmem:[#allocation3 + $0x8] sm:$0xff]  }
  0x26   :  { %562 = vmatprep.subr.bf16.mxu0 %v733_v0  ;;  %578 = vmatprep.mubr.msk.bf16.mxu0 %vm734_vm0, %v733_v0  ;;  %v650_v3 = vld [vmem:[#allocation3 + $0x10] sm:$0xff]   ;;  %v657_v4 = vld [vmem:[#allocation5] sm:$0xff]   ;;  %v651_v5 = vld [vmem:[#allocation3 + $0x18] sm:$0xff]  }
  0x27   :  { %582 = vmatprep.subr.bf16.mxu1 %v733_v0  ;;  %598 = vmatprep.mubr.msk.bf16.mxu1 %vm734_vm0, %v733_v0  ;;  %v658_v6 = vld [vmem:[#allocation5 + $0x8] sm:$0xff]   ;;  %v652_v7 = vld [vmem:[#allocation3 + $0x20] sm:$0xff]   ;;  %v659_v8 = vld [vmem:[#allocation5 + $0x10] sm:$0xff]  }
  0x28   :  { %563 = vmatpush3.bf16.msra.mxu0 %v648_v1  ;;  %583 = vmatpush3.bf16.msra.mxu1 %v657_v4  ;;  %v653_v9 = vld [vmem:[#allocation3 + $0x28] sm:$0xff]   ;;  %v660_v10 = vld [vmem:[#allocation5 + $0x18] sm:$0xff]   ;;  %v654_v11 = vld [vmem:[#allocation3 + $0x30] sm:$0xff]  }
  0x29   :  { %564 = vmatprep.subr.bf16.mxu0 %v733_v0  ;;  %584 = vmatprep.subr.bf16.mxu1 %v733_v0  ;;  %v661_v12 = vld [vmem:[#allocation5 + $0x20] sm:$0xff]   ;;  %v655_v13 = vld [vmem:[#allocation3 + $0x38] sm:$0xff]   ;;  %v662_v14 = vld [vmem:[#allocation5 + $0x28] sm:$0xff]  }
  0x2a   :  { %v656_v15 = vld [vmem:[%s828_s0] sm:$0xff]   ;;  %v663_v16 = vld [vmem:[#allocation5 + $0x30] sm:$0xff]   ;;  %v664_v17 = vld [vmem:[#allocation5 + $0x38] sm:$0xff]  }
  0x2b   :  { %v665_v18 = vld [vmem:[#allocation3 + $0x40] sm:$0xff]   ;;  %v666_v19 = vld [vmem:[#allocation3 + $0x48] sm:$0xff]   ;;  %v667_v20 = vld [vmem:[#allocation3 + $0x50] sm:$0xff]  }
  0x2c   :  { %565 = vmatpush3.bf16.msra.mxu0 %v649_v2  ;;  %585 = vmatpush3.bf16.msra.mxu1 %v658_v6  ;;  %v668_v21 = vld [vmem:[#allocation3 + $0x58] sm:$0xff]   ;;  %v669_v22 = vld [vmem:[#allocation3 + $0x60] sm:$0xff]   ;;  %v670_v23 = vld [vmem:[#allocation3 + $0x68] sm:$0xff]  }
  0x2d   :  { %566 = vmatprep.subr.bf16.mxu0 %v733_v0  ;;  %586 = vmatprep.subr.bf16.mxu1 %v733_v0  ;;  %v671_v24 = vld [vmem:[#allocation3 + $0x70] sm:$0xff]   ;;  %v672_v30 = vld [vmem:[#allocation3 + $0x78] sm:$0xff]   ;;  %v673_v31 = vld [vmem:[#allocation5 + $0x40] sm:$0xff]  }
  0x2e   :  { %v674_v32 = vld [vmem:[#allocation5 + $0x48] sm:$0xff]   ;;  %v675_v33 = vld [vmem:[#allocation5 + $0x50] sm:$0xff]   ;;  %v676_v34 = vld [vmem:[#allocation5 + $0x58] sm:$0xff]  }
  0x2f   :  { %v677_v35 = vld [vmem:[#allocation5 + $0x60] sm:$0xff]   ;;  %v678_v36 = vld [vmem:[#allocation5 + $0x68] sm:$0xff]   ;;  %v679_v37 = vld [vmem:[#allocation5 + $0x70] sm:$0xff]  }
  0x30   :  { %567 = vmatpush3.bf16.msra.mxu0 %v650_v3  ;;  %587 = vmatpush3.bf16.msra.mxu1 %v659_v8  ;;  %v680_v43 = vld [vmem:[#allocation5 + $0x78] sm:$0xff]  }
  0x31   :  { %568 = vmatprep.subr.bf16.mxu0 %v733_v0  ;;  %588 = vmatprep.subr.bf16.mxu1 %v733_v0 }
  0x34   :  { %569 = vmatpush3.bf16.msra.mxu0 %v651_v5  ;;  %589 = vmatpush3.bf16.msra.mxu1 %v660_v10 }
  0x35   :  { %570 = vmatprep.subr.bf16.mxu0 %v733_v0  ;;  %590 = vmatprep.subr.bf16.mxu1 %v733_v0 }
  0x38   :  { %571 = vmatpush3.bf16.msra.mxu0 %v652_v7  ;;  %591 = vmatpush3.bf16.msra.mxu1 %v661_v12 }
  0x39   :  { %572 = vmatprep.subr.bf16.mxu0 %v733_v0  ;;  %592 = vmatprep.subr.bf16.mxu1 %v733_v0 }
  0x3c   :  { %573 = vmatpush3.bf16.msra.mxu0 %v653_v9  ;;  %593 = vmatpush3.bf16.msra.mxu1 %v662_v14 }
  0x3d   :  { %574 = vmatprep.subr.bf16.mxu0 %v733_v0  ;;  %594 = vmatprep.subr.bf16.mxu1 %v733_v0 }
  0x40   :  { %575 = vmatpush3.bf16.msra.mxu0 %v654_v11  ;;  %595 = vmatpush3.bf16.msra.mxu1 %v663_v16 }
  0x41   :  { %576 = vmatprep.subr.bf16.mxu0 %v733_v0  ;;  %596 = vmatprep.subr.bf16.mxu1 %v733_v0 }
  0x44   :  { %577 = vmatpush3.bf16.msra.mxu0 %v655_v13  ;;  %597 = vmatpush3.bf16.msra.mxu1 %v664_v17 }
  0x45   :  { %602 = vmatprep.subr.bf16.mxu0 %v733_v0  ;;  %622 = vmatprep.subr.bf16.mxu1 %v733_v0 }
  0x47   :  { %579 = vmatmul.mubr.bf16.vlgmr.msra.gmra.mrb[0].mxu0 %v656_v15 }
  0x48   :  { %618 = vmatprep.mubr.msk.bf16.mxu0 %vm734_vm0, %v733_v0  ;;  %603 = vmatpush3.bf16.msra.mxu0 %v665_v18 }
  0x49   :  { %604 = vmatprep.subr.bf16.mxu0 %v733_v0 }
  0x4c   :  { %605 = vmatpush3.bf16.msra.mxu0 %v666_v19 }
  0x4d   :  { %606 = vmatprep.subr.bf16.mxu0 %v733_v0 }
  0x50   :  { %607 = vmatpush3.bf16.msra.mxu0 %v667_v20 }
  0x51   :  { %608 = vmatprep.subr.bf16.mxu0 %v733_v0 }
  0x54   :  { %609 = vmatpush3.bf16.msra.mxu0 %v668_v21 }
  0x55   :  { %610 = vmatprep.subr.bf16.mxu0 %v733_v0 }
  0x58   :  { %611 = vmatpush3.bf16.msra.mxu0 %v669_v22 }
  0x59   :  { %612 = vmatprep.subr.bf16.mxu0 %v733_v0 }
  0x5c   :  { %613 = vmatpush3.bf16.msra.mxu0 %v670_v23 }
  0x5d   :  { %614 = vmatprep.subr.bf16.mxu0 %v733_v0 }
  0x60   :  { %615 = vmatpush3.bf16.msra.mxu0 %v671_v24 }
  0x61   :  { %616 = vmatprep.subr.bf16.mxu0 %v733_v0 }
  0x64   :  { %617 = vmatpush3.bf16.msra.mxu0 %v672_v30 }
 0x11a   :  { %v151_v25 = vpop.f32.mrb[0].mxu0 }
 0x11b   :  { %v580_v26 = vpop.f32.mrb[1].mxu0 }
 0x11c   :  { %v154_v27 = vpop.f32.mrb[2].mxu0 }
 0x11d   :  { %v158_v28 = vpack.c.bf16 %v154_v27, %v151_v25  ;;  %v581_v29 = vpop.f32.mrb[3].mxu0 }
 0x11f   :  { %599 = vmatmul.mubr.bf16.vlgmr.msra.gmra.mrb[0].mxu1 %v158_v28 }
 0x120   :  { %638 = vmatprep.mubr.msk.bf16.mxu1 %vm734_vm0, %v733_v0  ;;  %623 = vmatpush3.bf16.msra.mxu1 %v673_v31 }
 0x121   :  { %624 = vmatprep.subr.bf16.mxu1 %v733_v0 }
 0x124   :  { %625 = vmatpush3.bf16.msra.mxu1 %v674_v32 }
 0x125   :  { %626 = vmatprep.subr.bf16.mxu1 %v733_v0 }
 0x128   :  { %627 = vmatpush3.bf16.msra.mxu1 %v675_v33 }
 0x129   :  { %628 = vmatprep.subr.bf16.mxu1 %v733_v0 }
 0x12c   :  { %629 = vmatpush3.bf16.msra.mxu1 %v676_v34 }
 0x12d   :  { %630 = vmatprep.subr.bf16.mxu1 %v733_v0 }
 0x130   :  { %631 = vmatpush3.bf16.msra.mxu1 %v677_v35 }
 0x131   :  { %632 = vmatprep.subr.bf16.mxu1 %v733_v0 }
 0x134   :  { %633 = vmatpush3.bf16.msra.mxu1 %v678_v36 }
 0x135   :  { %634 = vmatprep.subr.bf16.mxu1 %v733_v0 }
 0x138   :  { %635 = vmatpush3.bf16.msra.mxu1 %v679_v37 }
 0x139   :  { %636 = vmatprep.subr.bf16.mxu1 %v733_v0 }
 0x13c   :  { %637 = vmatpush3.bf16.msra.mxu1 %v680_v43 }
 0x1f2   :  { %v257_v38 = vpop.f32.mrb[0].mxu1 }
 0x1f3   :  { %v600_v39 = vpop.f32.mrb[1].mxu1 }
 0x1f4   :  { %v260_v40 = vpop.f32.mrb[2].mxu1 }
 0x1f5   :  { %v264_v41 = vpack.c.bf16 %v260_v40, %v257_v38  ;;  %v601_v42 = vpop.f32.mrb[3].mxu1 }
 0x1f7   :  { %619 = vmatmul.mubr.bf16.vlgmr.msra.gmra.mrb[4].mxu0 %v264_v41 }
 0x2ca   :  { %v366_v44 = vpop.f32.mrb[4].mxu0 }
 0x2cb   :  { %v620_v45 = vpop.f32.mrb[5].mxu0 }
 0x2cc   :  { %v369_v46 = vpop.f32.mrb[6].mxu0 }
 0x2cd   :  { %v373_v47 = vpack.c.bf16 %v369_v46, %v366_v44  ;;  %v621_v48 = vpop.f32.mrb[7].mxu0 }
 0x2cf   :  { %639 = vmatmul.mubr.bf16.vlgmr.msra.gmra.mrb[4].mxu1 %v373_v47 }
 0x3a2   :  { %v473_v49 = vpop.f32.mrb[4].mxu1 }
 0x3a3   :  { %v640_v50 = vpop.f32.mrb[5].mxu1 }
 0x3a4   :  { %v476_v51 = vpop.f32.mrb[6].mxu1 }
 0x3a5   :  { %v480_v52 = vpack.c.bf16 %v476_v51, %v473_v49  ;;  %v641_v53 = vpop.f32.mrb[7].mxu1 }
 0x3a7   :  { %v483_v54 = vunpack.c.l.bf16 %v480_v52  ;;  %v484_v55 = vunpack.c.h.bf16 %v480_v52 }
 0x3a9   :  { %485 = vst [vmem:[%s831_s3] sm:$0xff] %v483_v54  ;;  %486 = vst [vmem:[%s831_s3 + $0x8] sm:$0xff] %v484_v55 }
 0x3aa   :  { %491 = vsyncpa [#allocation4], 1 }
 0x3ab   :  { %492 = vsyncpa [#allocation6], 1 }

</bundles_post_ra>
